<compile_context>
chip_gen: v5e
topology: v5e:2x2
jax: 0.10.0
libtpu: 0.0.40
codegen_flags: <defaults>
</compile_context>

<pallas_src>
import jax
import jax.numpy as jnp
from jax import lax
from jax.experimental import pallas as pl
from jax.experimental.pallas import tpu as pltpu

OUTPUT_SIZE = 180
MIN_FREQ = 62.5
MAX_FREQ = 500.0

TILE = 8192                 # rows per grid step; multiple of 8 (f32 sublane)
VMEM_LIMIT_BYTES = 48 << 20  # covers double-buffered 8192-row tiles on all gens


def _init_params():
    """Deterministic parameter init mirroring the module's __init__ state.

    Neither parameter participates in forward(); kept only to mirror the module.
    """
    key = jax.random.PRNGKey(0)
    dummy_parameter = jax.random.uniform(key, (1,), dtype=jnp.float32)
    idx_pitch = jnp.exp2(
        jnp.linspace(jnp.log2(jnp.float32(MIN_FREQ)),
                     jnp.log2(jnp.float32(MAX_FREQ)),
                     OUTPUT_SIZE)
    ).astype(jnp.float32)
    return dummy_parameter, idx_pitch


def _round_up(a, b):
    return ((a + b - 1) // b) * b


def _one_hot_kernel(x_ref, o_ref):
    # x_ref: (tile, 1) int32 class indices
    # o_ref: (tile, OUTPUT_SIZE) float32 one-hot rows
    idx = x_ref[...]                                                   # (tile, 1)
    classes = lax.broadcasted_iota(jnp.int32, (1, OUTPUT_SIZE), 1)     # (1, 180)
    o_ref[...] = (idx == classes).astype(jnp.float32)


def _choose_tile(n):
    """Rows per grid step.

    Prefer TILE, but keep >= ~8 grid steps for medium n so a megacore chip
    (v7x) shards the grid across both TensorCores with small tail imbalance,
    and never exceed the (sublane-rounded) array extent.
    """
    tile = max(8, _round_up(pl.cdiv(n, 8), 8))
    tile = min(tile, TILE, _round_up(n, 8))
    return tile


def amazon_decoder_forward(x):
    """Equivalent of AmazonImplementationDecoder.forward.

    x: any-shape array of indices (int or float; floats truncate toward zero
       like torch .long()), values expected in [0, 180).
    returns: float32 array of shape x.shape + (180,).
    """
    orig_shape = x.shape
    n = 1
    for d in orig_shape:
        n *= d

    # int32 end-to-end; astype truncates toward zero, matching .long().
    x_flat = jnp.reshape(x, (n, 1)).astype(jnp.int32)

    tile = _choose_tile(n)
    grid = (pl.cdiv(n, tile),)   # partial final block: OOB output rows masked

    out = pl.pallas_call(
        _one_hot_kernel,
        out_shape=jax.ShapeDtypeStruct((n, OUTPUT_SIZE), jnp.float32),
        grid_spec=pl.GridSpec(
            grid=grid,
            in_specs=[pl.BlockSpec((tile, 1), lambda i: (i, 0))],
            out_specs=pl.BlockSpec((tile, OUTPUT_SIZE), lambda i: (i, 0)),
        ),
        compiler_params=pltpu.CompilerParams(
            dimension_semantics=("parallel",),
            vmem_limit_bytes=VMEM_LIMIT_BYTES),
        cost_estimate=pl.CostEstimate(
            flops=0,
            transcendentals=0,
            bytes_accessed=n * 4 + n * OUTPUT_SIZE * 4),
    )(x_flat)

    return jnp.reshape(out, orig_shape + (OUTPUT_SIZE,))


if __name__ == "__main__":
    # Parameters exist only to mirror the module's state; unused in forward.
    dummy_parameter, idx_pitch = _init_params()

    key = jax.random.PRNGKey(0)
    k1, k2 = jax.random.split(key)

    # Deterministic small example: batch=2, seq=8 of integer class indices.
    x = jax.random.randint(k1, (2, 8), minval=0, maxval=OUTPUT_SIZE,
                           dtype=jnp.int32)
    y = jax.block_until_ready(amazon_decoder_forward(x))
    ref = jax.nn.one_hot(x, OUTPUT_SIZE, dtype=jnp.float32)
    assert y.shape == (2, 8, OUTPUT_SIZE)
    assert y.dtype == jnp.float32
    assert bool(jnp.all(y == ref))

    # Odd-sized input exercises the partial final block (masked OOB writes).
    x2 = jax.random.randint(k2, (3, 7), minval=0, maxval=OUTPUT_SIZE,
                            dtype=jnp.int32)
    y2 = jax.block_until_ready(amazon_decoder_forward(x2))
    ref2 = jax.nn.one_hot(x2, OUTPUT_SIZE, dtype=jnp.float32)
    assert y2.shape == (3, 7, OUTPUT_SIZE)
    assert bool(jnp.all(y2 == ref2))

    print("KERNEL_OK")
</pallas_src>

<mosaic_0001>
module attributes {stable_mosaic.version = 11 : i64} {
  func.func @_one_hot_kernel(%arg0: i32, %arg1: memref<8x1xi32, #tpu.memory_space<vmem>>, %arg2: memref<8x180xf32, #tpu.memory_space<vmem>>) attributes {dimension_semantics = [#tpu.dimension_semantics<parallel>], iteration_bounds = array<i64: 2>, scalar_prefetch = 0 : i64, scratch_operands = 0 : i64, tpu.core_type = #tpu.core_type<tc>, window_params = [{transform_indices = @transform_0, window_bounds = array<i64: 8, 1>}, {transform_indices = @transform_1, window_bounds = array<i64: 8, 180>}]} {
    %c0 = arith.constant 0 : index
    %c0_0 = arith.constant 0 : index
    %0 = vector.load %arg1[%c0, %c0_0] : memref<8x1xi32, #tpu.memory_space<vmem>>, vector<8x1xi32>
    %1 = tpu.iota {dimensions = array<i32: 1>} : vector<1x180xi32>
    %2 = vector.broadcast %0 : vector<8x1xi32> to vector<8x180xi32>
    %3 = vector.broadcast %1 : vector<1x180xi32> to vector<8x180xi32>
    %4 = arith.cmpi eq, %2, %3 : vector<8x180xi32>
    %5 = arith.extui %4 : vector<8x180xi1> to vector<8x180xi32>
    %6 = arith.sitofp %5 : vector<8x180xi32> to vector<8x180xf32>
    %c0_1 = arith.constant 0 : index
    %c0_2 = arith.constant 0 : index
    %7 = vector.load %arg2[%c0_1, %c0_2] : memref<8x180xf32, #tpu.memory_space<vmem>>, vector<8x180xf32>
    tpu.vector_store %arg2[%c0_1, %c0_2], %6 {strides = array<i32>} : memref<8x180xf32, #tpu.memory_space<vmem>>, vector<8x180xf32>,
    return
  }
  func.func @transform_0(%arg0: i32) -> (i32, i32) {
    %c0_i32 = arith.constant 0 : i32
    %c0_i32_0 = arith.constant 0 : i32
    return %arg0, %c0_i32 : i32, i32
  }
  func.func @transform_1(%arg0: i32) -> (i32, i32) {
    %c0_i32 = arith.constant 0 : i32
    %c0_i32_0 = arith.constant 0 : i32
    return %arg0, %c0_i32 : i32, i32
  }
}

</mosaic_0001>

<bundles_post_ra>
// kernel: tpu_custom_call.1
= control target key start
LH: loop header
LB: loop body
LE: loop exit
PB: predicated region body
PF: predicated region fallthrough
CT: control target
= control target key end

     0   :  { %6 = vsyncpa [#allocation3], 0  ;;  %s421_s0 = inlined_call_operand.vmem [shape: s32[16,1], index: 0, kind: input, shape index: {}]   ;;  %s422_s1 = inlined_call_operand.hbm [shape: f32[16,180], index: 1, kind: output, shape index: {}]  }
   0x1   :  { %8 = vsyncpa [#allocation3 + $0x1], 0  ;;  %s336_s6 = smov 0   ;;  %s338_s7 = smov 0  }
   0x2   :  { %s340_s8 = smov 0   ;;  %s342_s9 = smov 0  }
   0x3 LB: > { %s357_s10 = sadd.s32 4294967295, %s322_s9   ;;  %s204_s11 = sadd.s32 4294967294, %s322_s9   ;;  %s322_s9 = sphi %s342_s9, %s428_s9   ;;  %s318_s8 = sphi %s340_s8, %s427_s8   ;;  %s314_s7 = sphi %s338_s7, %s426_s7   ;;  %s310_s6 = sphi %s336_s6, %s425_s6  }
   0x4   : > { %s361_s12 = sadd.s32 1, %s322_s9   ;;  %s47_s13 = sadd.s32 1, %s318_s8 }
   0x5   : > { %s44_s14 = ssub.s32 %s322_s9, %s361_s12  ;;  %p57_p0 = scmp.ne.s32.totalorder %s318_s8, %s314_s7 }
   0x6   : > { %p45_p1 = scmp.eq.s32.totalorder %s44_s14, 0  ;;  %p58_p2 = scmp.eq.s32.totalorder %s357_s10, 1 }
   0x7   : > { %p63_p3 = scmp.ne.s32.totalorder %s314_s7, %s310_s6  ;;  %p64_p4 = scmp.eq.s32.totalorder %s204_s11, 1 }
   0x8   : > { %s372_s15 = scalar_select %p45_p1, %s318_s8, %s47_s13  }
   0x9   : > { %p374_p5 = por %p58_p2, %p57_p0  ;;  %p378_p6 = por %p64_p4, %p63_p3 }
   0xa   : > { %p207_p7 = scmp.ge.s32.totalorder %s322_s9, 1  ;;  %p89_p8 = scmp.lt.s32.totalorder %s322_s9, 3 }
   0xc   : > { %p90_p9 = pnand %p207_p7, %p89_p8 }
   0xd   : > { %p108_p10 = scmp.lt.s32.totalorder (!%p90_p9), %s357_s10, 1  ;;  %s105_s23 = sand.u32 (!%p90_p9), 1, %s314_s7  }
   0xe   : > { %93 = sbr.rel (%p90_p9) target bundleno = 145 (0x91), region = 24  ;;  %s208_s24 = sshll.u32 (!%p90_p9), %s105_s23, 4 }
   0xf   : > { %s217_s25 = sshll.u32 (!%p90_p9), %s357_s10, 4  ;;  %s107_s29 = scalar_lea.vmem (!%p90_p9), [#allocation2], %s208_s24 }
  0x10   : > { %s140_s28 = scalar_lea.hbm (!%p90_p9), %s422_s1, %s217_s25  ;;  %s142_s30 = sshll.u32 (!%p90_p9), %s107_s29, 4  ;;  %s143_s30 = int_to_ptr.vmem [resolvable:$true] %s142_s30 }
  0x11   : > { %s144_s2 = sshll.u32 (!%p90_p9), %s140_s28, 4  ;;  %s129_s3 = scalar_lea.sflag (!%p90_p9), [#allocation3], %s105_s23  ;;  %s145_s2 = int_to_ptr.hbm [resolvable:$true] %s144_s2 }
  0x12   : > { %s274_s4 = sshra.s32 (!%p90_p9), %s145_s2, 4  ;;  %s280_s13 = scalar_lea.hbm (!%p90_p9), %s422_s1, 32  ;;  %s275_s4 = int_to_ptr.hbm [resolvable:$true] %s274_s4 }
  0x13   : > { %v324_v0 = vmov 0   ;;  %s109_s18 = scalar_select %p108_p10, %s357_s10, 1  ;;  %v113_v2 = vlaneseq  ;;  %vm126_vm0 = vcmask 424960   ;;  %v325_v6 = vmov 0.0  }
  0x14   : > { %259 = vset.pattern.permute.xlu0 %v324_v0  ;;  %s276_s5 = scalar_lea.hbm %s275_s4, 16  ;;  %p281_p0 = scmp.lt.s32.totalorder %s275_s4, %s422_s1 }
  0x15   : > { %s209_s19 = sshll.u32 %s109_s18, 3  ;;  %v114_v3 = vand.u32 127, %v113_v2  ;;  %p277_p11 = scmp.ne.s32.totalorder %s275_s4, %s276_s5 }
  0x16   : > { %s111_s22 = scalar_lea.vmem %s421_s0, %s209_s19  ;;  %p282_p1 = scmp.lt.s32.totalorder %s280_s13, %s276_s5 }
  0x17   : > { %v112_v1 = vld [vmem:[%s111_s22] sm:$0xff]  ;;  %v115_v4 = vadd.s32 128, %v114_v3  ;;  %p278_p12 = pnand %p277_p11, %p374_p5 }
  0x18   : > { %117 = vperm.xlu0 %259, %v112_v1   ;;  %p283_p2 = por %p282_p1, %p281_p0 }
  0x19   : > { %p279_p13 = pneg %p278_p12 }
  0x1b   : > { %p284_p3 = pnand %p283_p2, %p279_p13 }
  0x8a   : > { %v118_v5 = vpop.permute.xlu0 %117 }
  0x8b   : > { %vm119_vm1 = vcmp.eq.s32.totalorder %v118_v5, %v114_v3  ;;  %vm120_vm2 = vcmp.eq.s32.totalorder %v118_v5, %v115_v4 }
  0x8c   : > { %v210_v7 = vsel %vm119_vm1, 1.0, %v325_v6  ;;  %v211_v8 = vsel %vm120_vm2, 1.0, %v325_v6 }
  0x8d   : > { %125 = vst [vmem:[%s107_s29] sm:$0xff] %v210_v7 }
  0x8e   : > { %127 = vst.msk [vmem:[%s107_s29 + $0x8] sm:$0xff] %vm126_vm0, %v211_v8 }
  0x8f   : > { %287 = shalt.err (!%p284_p3)
}
  0x90   : > { %218 = dma.vmem_to_hbm [thread:$0]  (%p374_p5), %s143_s30, 256, %s145_s2, %s129_s3  }
  0x91 PF: > { %p224_p4 = scmp.ge.s32.totalorder %s322_s9, 2  ;;  %s156_s19 = sand.u32 1, %s310_s6  }
  0x92   : > { %s157_s20 = scalar_lea.sflag [#allocation3], %s156_s19 }
  0x93   : > { %p221_p7 = pnand %p224_p4, %p378_p6 }
  0x95   : > { %p222_p8 = pneg %p221_p7 }
  0x97   : > { %305 = dma.done.wait (%p222_p8), %s157_s20, 256  }
  0x98   : > { %307 = vsyncadd (%p222_p8), %s157_s20, 4294967040  ;;  %p11_p9 = scmp.ge.s32.totalorder %s361_s12, 4   ;;  %s425_s6 = smov %s314_s7 }
  0x99   : > { %s426_s7 = smov %s318_s8  ;;  %s427_s8 = smov %s372_s15 }
  0x9a   : > { %s428_s9 = smov %s361_s12  ;;  %13 = sbr.rel (!%p11_p9) target bundleno = 3 (0x3), region = 59 }
  0x9f   :  { %163 = vsyncpa [#allocation3], 1 }
  0xa0   :  { %165 = vsyncpa [#allocation3 + $0x1], 1 }

</bundles_post_ra>
